<compile_context>
chip_gen: v7x
topology: tpu7x:2x2x1
jax: 0.10.0
libtpu: 0.0.40
codegen_flags: <defaults>
</compile_context>

<pallas_src>
import functools
import math

import jax
import jax.numpy as jnp
from jax import lax
from jax.experimental import pallas as pl
from jax.experimental.pallas import tpu as pltpu

_NEG_INF = -1e30          # running-max init (finite: avoids inf-inf corner cases)
_MASK_FILL = -1e9         # matches masked_fill(mask == 0, -1e9)


# ------------------------------ in-kernel helpers ------------------------------

def _layernorm_rows(x, a, b, eps):
    """PyTorch-variant LayerNorm: unbiased std and (std + eps) divisor."""
    d = x.shape[-1]
    mean = jnp.mean(x, axis=-1, keepdims=True)
    diff = x - mean
    var = jnp.sum(diff * diff, axis=-1, keepdims=True) / (d - 1)
    std = jnp.sqrt(var)
    return a * diff / (std + eps) + b


def _flash_update(q, k, v, mask_blk, m_sc, l_sc, acc_sc, num_heads, scale):
    """One K/V-tile step of online-softmax multi-head attention.

    q: (tq, D) bf16, k/v: (tk, D) bf16, mask_blk: (1 or tq, tk) int8.
    m_sc/l_sc: (tq, H) f32 scratch, acc_sc: (tq, D) f32 scratch.
    """
    tq, d = q.shape
    tk = k.shape[0]
    dk = d // num_heads
    neg = jnp.broadcast_to(mask_blk == 0, (tq, tk))
    for h in range(num_heads):                       # static unroll over heads
        sl = slice(h * dk, (h + 1) * dk)
        # NT matmul via dot_general (contract last dims): no traced transpose.
        s = lax.dot_general(q[:, sl], k[:, sl], (((1,), (1,)), ((), ())),
                            preferred_element_type=jnp.float32) * scale
        s = jnp.where(neg, _MASK_FILL, s)
        m_old = m_sc[:, h:h + 1]
        m_new = jnp.maximum(m_old, jnp.max(s, axis=-1, keepdims=True))
        alpha = jnp.exp(m_old - m_new)
        p = jnp.exp(s - m_new)
        l_sc[:, h:h + 1] = alpha * l_sc[:, h:h + 1] + jnp.sum(p, axis=-1, keepdims=True)
        acc_sc[:, sl] = alpha * acc_sc[:, sl] + jnp.dot(
            p.astype(jnp.bfloat16), v[:, sl], preferred_element_type=jnp.float32)
        m_sc[:, h:h + 1] = m_new


def _flash_finalize(x_res, wo, bo, l_sc, acc_sc, o_ref, num_heads):
    """Normalize accumulators per head (in place), apply Wo + residual, store."""
    tq, d = acc_sc.shape
    dk = d // num_heads
    inv = pl.reciprocal(l_sc[...], approx=False)     # exact divide, once per q tile
    for h in range(num_heads):                       # no concat: in-place scratch
        sl = slice(h * dk, (h + 1) * dk)
        acc_sc[:, sl] = acc_sc[:, sl] * inv[:, h:h + 1]
    ctx = acc_sc[...].astype(jnp.bfloat16)           # (tq, D) lane-dense
    out = jnp.dot(ctx, wo, preferred_element_type=jnp.float32) + bo
    o_ref[0] = (x_res + out).astype(o_ref.dtype)


def _flash_init(m_sc, l_sc, acc_sc):
    m_sc[...] = jnp.full(m_sc.shape, _NEG_INF, m_sc.dtype)
    l_sc[...] = jnp.zeros(l_sc.shape, l_sc.dtype)
    acc_sc[...] = jnp.zeros(acc_sc.shape, acc_sc.dtype)


# ------------------------------ fused kernels ------------------------------

def _ln_qkv_proj_kernel(x_ref, lna_ref, lnb_ref, w_ref, b_ref,
                        q_ref, k_ref, v_ref, *, eps):
    """y = LN(x); q|k|v = y @ Wqkv + bqkv  (row-tiled, full-M MXU GEMM)."""
    x = x_ref[...].astype(jnp.float32)
    d = x.shape[1]
    y = _layernorm_rows(x, lna_ref[...], lnb_ref[...], eps)
    qkv = jnp.dot(y.astype(jnp.bfloat16), w_ref[...],
                  preferred_element_type=jnp.float32) + b_ref[...]
    q_ref[...] = qkv[:, :d].astype(q_ref.dtype)
    k_ref[...] = qkv[:, d:2 * d].astype(k_ref.dtype)
    v_ref[...] = qkv[:, 2 * d:].astype(v_ref.dtype)


def _kv_proj_kernel(x_ref, w_ref, b_ref, k_ref, v_ref):
    """k|v = x @ Wkv + bkv  (encoder memory; no LayerNorm, per the reference)."""
    x = x_ref[...].astype(jnp.bfloat16)
    d = k_ref.shape[1]
    kv = jnp.dot(x, w_ref[...], preferred_element_type=jnp.float32) + b_ref[...]
    k_ref[...] = kv[:, :d].astype(k_ref.dtype)
    v_ref[...] = kv[:, d:].astype(v_ref.dtype)


def _self_flash_kernel(q_ref, k_ref, v_ref, mask_ref, xr_ref, wo_ref, bo_ref,
                       o_ref, m_sc, l_sc, acc_sc, *, num_heads, scale, causal):
    """Flash self-attention over (B, n_q, n_k) grid + Wo + residual."""
    qi = pl.program_id(1)
    ki = pl.program_id(2)
    n_k = pl.num_programs(2)
    tq = q_ref.shape[1]
    tk = k_ref.shape[1]
    if causal:   # skip K tiles that lie fully above the diagonal
        last_k = jnp.minimum(n_k - 1, (qi * tq + tq - 1) // tk)
    else:
        last_k = n_k - 1

    @pl.when(ki == 0)
    def _():
        _flash_init(m_sc, l_sc, acc_sc)

    @pl.when(ki <= last_k)
    def _():
        _flash_update(q_ref[0], k_ref[0], v_ref[0], mask_ref[0],
                      m_sc, l_sc, acc_sc, num_heads, scale)

    @pl.when(ki == last_k)
    def _():
        _flash_finalize(xr_ref[0].astype(jnp.float32), wo_ref[...], bo_ref[...],
                        l_sc, acc_sc, o_ref, num_heads)


def _src_flash_kernel(xr_ref, k_ref, v_ref, mask_ref, lna_ref, lnb_ref,
                      wq_ref, bq_ref, wo_ref, bo_ref,
                      o_ref, q_sc, m_sc, l_sc, acc_sc, *, num_heads, scale, eps):
    """Flash cross-attention: Q = LN(x) @ Wq computed once per q tile (ki==0)."""
    ki = pl.program_id(2)
    n_k = pl.num_programs(2)

    @pl.when(ki == 0)
    def _():
        x = xr_ref[0].astype(jnp.float32)
        y = _layernorm_rows(x, lna_ref[...], lnb_ref[...], eps)
        q = jnp.dot(y.astype(jnp.bfloat16), wq_ref[...],
                    preferred_element_type=jnp.float32) + bq_ref[...]
        q_sc[...] = q.astype(q_sc.dtype)
        _flash_init(m_sc, l_sc, acc_sc)

    _flash_update(q_sc[...], k_ref[0], v_ref[0], mask_ref[0],
                  m_sc, l_sc, acc_sc, num_heads, scale)

    @pl.when(ki == n_k - 1)
    def _():
        _flash_finalize(xr_ref[0].astype(jnp.float32), wo_ref[...], bo_ref[...],
                        l_sc, acc_sc, o_ref, num_heads)


def _ffn_kernel(x_ref, lna_ref, lnb_ref, w1_ref, b1_ref, w2_ref, b2_ref,
                flna_ref, flnb_ref, o_ref, *, eps, fuse_final_ln):
    """LN + W1 + ReLU + W2 + residual (+ optional fused final decoder LN)."""
    x = x_ref[...].astype(jnp.float32)
    y = _layernorm_rows(x, lna_ref[...], lnb_ref[...], eps)
    h = jnp.dot(y.astype(jnp.bfloat16), w1_ref[...],
                preferred_element_type=jnp.float32) + b1_ref[...]
    h = jnp.maximum(h, 0.0)
    out = x + jnp.dot(h.astype(jnp.bfloat16), w2_ref[...],
                      preferred_element_type=jnp.float32) + b2_ref[...]
    if fuse_final_ln:
        out = _layernorm_rows(out, flna_ref[...], flnb_ref[...], eps)
    o_ref[...] = out.astype(o_ref.dtype)


def _layernorm_kernel(x_ref, a_ref, b_ref, o_ref, *, eps):
    x = x_ref[...].astype(jnp.float32)
    o_ref[...] = _layernorm_rows(x, a_ref[...], b_ref[...], eps).astype(o_ref.dtype)


# --------------------------- spec / tiling helpers ---------------------------

_SINGLE_BUFFER_OK = None


def _single_buffer_ok():
    """Probe once whether pipeline_mode=pl.Buffered(1) lowers on this backend."""
    global _SINGLE_BUFFER_OK
    if _SINGLE_BUFFER_OK is None:
        try:
            def _probe(x_ref, o_ref):
                o_ref[...] = x_ref[...] + 1.0
            spec = pl.BlockSpec((8, 128), lambda i: (0, 0),
                                pipeline_mode=pl.Buffered(1))
            out = pl.pallas_call(
                _probe, grid=(1,),
                in_specs=[spec],
                out_specs=pl.BlockSpec((8, 128), lambda i: (0, 0)),
                out_shape=jax.ShapeDtypeStruct((8, 128), jnp.float32),
            )(jnp.zeros((8, 128), jnp.float32))
            jax.block_until_ready(out)
            _SINGLE_BUFFER_OK = True
        except Exception:
            _SINGLE_BUFFER_OK = False
    return _SINGLE_BUFFER_OK


def _const_spec(shape):
    """Constant-index (resident) BlockSpec; single-buffered if supported."""
    idx = lambda *_: (0,) * len(shape)
    if _single_buffer_ok():
        return pl.BlockSpec(shape, idx, pipeline_mode=pl.Buffered(1))
    return pl.BlockSpec(shape, idx)


def _bytes(shape, dtype):
    return int(math.prod(shape)) * jnp.dtype(dtype).itemsize


def _vmem_limit(buffers):
    """Explicit scoped-VMEM request from block shapes, with headroom."""
    total = sum(_bytes(s, d) * n for s, d, n in buffers)
    return int(min(max(2 * total + (4 << 20), 16 << 20), 64 << 20))


def _row_tile_target():
    """Per-generation row-tile target for the row-parallel GEMM kernels."""
    try:
        kind = jax.devices()[0].device_kind.lower()
    except Exception:
        return 256
    if "v5" in kind and ("lite" in kind or "5e" in kind):
        return 256            # v5e: 16 MiB default scoped VMEM
    if "v6" in kind:
        return 1024           # v6e: big tiles amortize ~0.35 us/step overhead
    return 512                # v7x and others: 64 MiB VMEM per TC


def _pick_row_tile(m, target):
    if m <= target:
        return m
    start = (min(target, m) // 8) * 8
    for cand in range(start, 7, -8):
        if m % cand == 0:
            return cand
    return m


def _pick_attn_tile(n, target, grans):
    """Largest divisor of n that is a multiple of one of `grans` and <= target."""
    if n <= target:
        return n
    for gran in grans:
        c = (min(target, n) // gran) * gran
        while c >= gran:
            if n % c == 0:
                return c
            c -= gran
    return n


# ------------------------------ pallas_call wrappers ------------------------------

def self_qkv_proj(x, p, eps=1e-6):
    """LN0 + fused QKV projection over all B*T rows (bf16 outputs)."""
    B, T, D = x.shape
    M = B * T
    tile = _pick_row_tile(M, _row_tile_target())
    sa = p["self_attn"]
    buffers = [((tile, D), jnp.float32, 2), ((tile, D), jnp.bfloat16, 6),
               ((tile, 3 * D), jnp.float32, 2),
               ((D, 3 * D), jnp.bfloat16, 2), ((1, 3 * D), jnp.float32, 2)]
    q, k, v = pl.pallas_call(
        functools.partial(_ln_qkv_proj_kernel, eps=eps),
        grid=(M // tile,),
        in_specs=[
            pl.BlockSpec((tile, D), lambda i: (i, 0)),
            _const_spec((1, D)), _const_spec((1, D)),
            _const_spec((D, 3 * D)), _const_spec((1, 3 * D)),
        ],
        out_specs=[pl.BlockSpec((tile, D), lambda i: (i, 0))] * 3,
        out_shape=[jax.ShapeDtypeStruct((M, D), jnp.bfloat16)] * 3,
        compiler_params=pltpu.CompilerParams(
            dimension_semantics=("parallel",),
            vmem_limit_bytes=_vmem_limit(buffers)),
    )(x.reshape(M, D), p["ln0_a"], p["ln0_b"], sa["wqkv"], sa["bqkv"])
    return (q.reshape(B, T, D), k.reshape(B, T, D), v.reshape(B, T, D))


def src_kv_proj(memory, p):
    """Fused K|V projection of the encoder memory (bf16 outputs, no LN)."""
    B, S, D = memory.shape
    M = B * S
    tile = _pick_row_tile(M, _row_tile_target())
    sa = p["src_attn"]
    buffers = [((tile, D), memory.dtype, 2), ((tile, D), jnp.bfloat16, 4),
               ((tile, 2 * D), jnp.float32, 2),
               ((D, 2 * D), jnp.bfloat16, 2), ((1, 2 * D), jnp.float32, 2)]
    k, v = pl.pallas_call(
        _kv_proj_kernel,
        grid=(M // tile,),
        in_specs=[
            pl.BlockSpec((tile, D), lambda i: (i, 0)),
            _const_spec((D, 2 * D)), _const_spec((1, 2 * D)),
        ],
        out_specs=[pl.BlockSpec((tile, D), lambda i: (i, 0))] * 2,
        out_shape=[jax.ShapeDtypeStruct((M, D), jnp.bfloat16)] * 2,
        compiler_params=pltpu.CompilerParams(
            dimension_semantics=("parallel",),
            vmem_limit_bytes=_vmem_limit(buffers)),
    )(memory.reshape(M, D), sa["wkv"], sa["bkv"])
    return k.reshape(B, S, D), v.reshape(B, S, D)


def _mask_block(mask, tq, tk):
    mB, mT, _ = mask.shape
    mq = 1 if mT == 1 else tq

    def idx(b, qi, ki):
        return (b if mB > 1 else 0, qi if mT > 1 else 0, ki)

    return pl.BlockSpec((1, mq, tk), idx), mq


def self_flash_attn(x, q, k, v, tgt_mask_i8, p, num_heads, causal, attn_tile):
    """Flash-tiled self-attention + Wo + residual. Grid (B, n_q, n_k)."""
    B, T, D = x.shape
    tq = _pick_attn_tile(T, attn_tile, grans=(128, 32))
    tk = _pick_attn_tile(T, attn_tile, grans=(128,))
    n_q, n_k = T // tq, T // tk
    sa = p["self_attn"]
    scale = 1.0 / math.sqrt(D // num_heads)
    mask_spec, mq = _mask_block(tgt_mask_i8, tq, tk)

    q_map = lambda b, qi, ki: (b, qi, 0)
    kv_map = lambda b, qi, ki: (b, ki, 0)

    buffers = [((1, tq, D), jnp.bfloat16, 2), ((1, tk, D), jnp.bfloat16, 4),
               ((1, mq, tk), jnp.int8, 2), ((1, tq, D), x.dtype, 4),
               ((D, D), jnp.bfloat16, 2), ((1, D), jnp.float32, 2),
               ((tq, D), jnp.float32, 1), ((tq, num_heads), jnp.float32, 2),
               ((tq, tk), jnp.float32, 4)]

    return pl.pallas_call(
        functools.partial(_self_flash_kernel, num_heads=num_heads,
                          scale=scale, causal=causal),
        grid=(B, n_q, n_k),
        in_specs=[
            pl.BlockSpec((1, tq, D), q_map),        # q (bf16, precomputed)
            pl.BlockSpec((1, tk, D), kv_map),       # k
            pl.BlockSpec((1, tk, D), kv_map),       # v
            mask_spec,                              # tgt mask (int8, un-broadcast)
            pl.BlockSpec((1, tq, D), q_map),        # x (residual)
            _const_spec((D, D)), _const_spec((1, D)),
        ],
        out_specs=pl.BlockSpec((1, tq, D), q_map),
        out_shape=jax.ShapeDtypeStruct((B, T, D), x.dtype),
        scratch_shapes=[pltpu.VMEM((tq, num_heads), jnp.float32),
                        pltpu.VMEM((tq, num_heads), jnp.float32),
                        pltpu.VMEM((tq, D), jnp.float32)],
        compiler_params=pltpu.CompilerParams(
            dimension_semantics=("parallel", "parallel", "arbitrary"),
            vmem_limit_bytes=_vmem_limit(buffers)),
    )(q, k, v, tgt_mask_i8, x, sa["wo"], sa["bo"])


def src_flash_attn(x, k_src, v_src, src_mask_i8, p, num_heads, attn_tile, eps=1e-6):
    """Flash-tiled cross-attention (Q computed in-kernel at ki==0) + Wo + residual."""
    B, T, D = x.shape
    S = k_src.shape[1]
    tq = _pick_attn_tile(T, attn_tile, grans=(128, 32))
    tk = _pick_attn_tile(S, attn_tile, grans=(128,))
    n_q, n_k = T // tq, S // tk
    sa = p["src_attn"]
    scale = 1.0 / math.sqrt(D // num_heads)
    mask_spec, mq = _mask_block(src_mask_i8, tq, tk)

    q_map = lambda b, qi, ki: (b, qi, 0)
    kv_map = lambda b, qi, ki: (b, ki, 0)

    buffers = [((1, tq, D), x.dtype, 4), ((1, tk, D), jnp.bfloat16, 4),
               ((1, mq, tk), jnp.int8, 2),
               ((D, D), jnp.bfloat16, 4), ((1, D), jnp.float32, 6),
               ((tq, D), jnp.float32, 1), ((tq, D), jnp.bfloat16, 1),
               ((tq, num_heads), jnp.float32, 2), ((tq, tk), jnp.float32, 4)]

    return pl.pallas_call(
        functools.partial(_src_flash_kernel, num_heads=num_heads,
                          scale=scale, eps=eps),
        grid=(B, n_q, n_k),
        in_specs=[
            pl.BlockSpec((1, tq, D), q_map),        # x (residual + Q source)
            pl.BlockSpec((1, tk, D), kv_map),       # k (memory, precomputed)
            pl.BlockSpec((1, tk, D), kv_map),       # v
            mask_spec,                              # src mask (int8)
            _const_spec((1, D)), _const_spec((1, D)),       # ln1
            _const_spec((D, D)), _const_spec((1, D)),       # wq, bq
            _const_spec((D, D)), _const_spec((1, D)),       # wo, bo
        ],
        out_specs=pl.BlockSpec((1, tq, D), q_map),
        out_shape=jax.ShapeDtypeStruct((B, T, D), x.dtype),
        scratch_shapes=[pltpu.VMEM((tq, D), jnp.bfloat16),
                        pltpu.VMEM((tq, num_heads), jnp.float32),
                        pltpu.VMEM((tq, num_heads), jnp.float32),
                        pltpu.VMEM((tq, D), jnp.float32)],
        compiler_params=pltpu.CompilerParams(
            dimension_semantics=("parallel", "parallel", "arbitrary"),
            vmem_limit_bytes=_vmem_limit(buffers)),
    )(x, k_src, v_src, src_mask_i8, p["ln1_a"], p["ln1_b"],
      sa["wq"], sa["bq"], sa["wo"], sa["bo"])


def ffn_block(x, p, final_ln=None, eps=1e-6):
    """LN2 + FFN + residual (+ fused final decoder LN for the last layer)."""
    B, T, D = x.shape
    M = B * T
    dff = p["ff"]["w1"].shape[1]
    tile = _pick_row_tile(M, _row_tile_target())
    fuse = final_ln is not None
    flna = final_ln[0] if fuse else p["ln2_a"]
    flnb = final_ln[1] if fuse else p["ln2_b"]
    buffers = [((tile, D), x.dtype, 2), ((tile, D), jnp.float32, 2),
               ((tile, dff), jnp.float32, 2),
               ((D, dff), jnp.bfloat16, 2), ((dff, D), jnp.bfloat16, 2),
               ((1, dff), jnp.float32, 2), ((1, D), jnp.float32, 10),
               ((tile, D), x.dtype, 2)]
    out = pl.pallas_call(
        functools.partial(_ffn_kernel, eps=eps, fuse_final_ln=fuse),
        grid=(M // tile,),
        in_specs=[
            pl.BlockSpec((tile, D), lambda i: (i, 0)),
            _const_spec((1, D)), _const_spec((1, D)),
            _const_spec((D, dff)), _const_spec((1, dff)),
            _const_spec((dff, D)), _const_spec((1, D)),
            _const_spec((1, D)), _const_spec((1, D)),
        ],
        out_specs=pl.BlockSpec((tile, D), lambda i: (i, 0)),
        out_shape=jax.ShapeDtypeStruct((M, D), x.dtype),
        compiler_params=pltpu.CompilerParams(
            dimension_semantics=("parallel",),
            vmem_limit_bytes=_vmem_limit(buffers)),
    )(x.reshape(M, D), p["ln2_a"], p["ln2_b"],
      p["ff"]["w1"], p["ff"]["b1"], p["ff"]["w2"], p["ff"]["b2"], flna, flnb)
    return out.reshape(B, T, D)


def pallas_layernorm(x, a, b, eps=1e-6):
    B, T, D = x.shape
    M = B * T
    tile = _pick_row_tile(M, _row_tile_target())
    buffers = [((tile, D), x.dtype, 4), ((1, D), jnp.float32, 4)]
    out = pl.pallas_call(
        functools.partial(_layernorm_kernel, eps=eps),
        grid=(M // tile,),
        in_specs=[
            pl.BlockSpec((tile, D), lambda i: (i, 0)),
            _const_spec((1, D)), _const_spec((1, D)),
        ],
        out_specs=pl.BlockSpec((tile, D), lambda i: (i, 0)),
        out_shape=jax.ShapeDtypeStruct((M, D), x.dtype),
        compiler_params=pltpu.CompilerParams(
            dimension_semantics=("parallel",),
            vmem_limit_bytes=_vmem_limit(buffers)),
    )(x.reshape(M, D), a, b)
    return out.reshape(B, T, D)


# ------------------------------- model glue -------------------------------

def decoder_layer(x, memory, src_mask_i8, tgt_mask_i8, p, num_heads,
                  causal_tgt, attn_tile, final_ln=None):
    # SublayerConnection: x + dropout(sublayer(norm(x))) with dropout = 0.
    q, k, v = self_qkv_proj(x, p)
    x = self_flash_attn(x, q, k, v, tgt_mask_i8, p, num_heads, causal_tgt, attn_tile)
    ks, vs = src_kv_proj(memory, p)
    x = src_flash_attn(x, ks, vs, src_mask_i8, p, num_heads, attn_tile)
    x = ffn_block(x, p, final_ln=final_ln)
    return x


def decoder_forward(x, memory, src_mask, tgt_mask, params, num_heads,
                    return_intermediate=False, causal_tgt=True,
                    attn_tile=256, act_dtype=jnp.bfloat16):
    """Decoder.forward.  `causal_tgt=True` assumes tgt_mask includes the standard
    subsequent (causal) mask, enabling exact skipping of above-diagonal K tiles."""
    D = x.shape[-1]
    assert D % num_heads == 0
    src_mask_i8 = src_mask.astype(jnp.int8)            # un-broadcast, 4x less DMA
    tgt_mask_i8 = tgt_mask.astype(jnp.int8)
    x = x.astype(act_dtype)                             # bf16 residual stream
    memory = memory.astype(act_dtype)
    n = len(params["layers"])
    final_ln = (params["norm_a"], params["norm_b"])
    z = []
    for li, layer_p in enumerate(params["layers"]):
        fuse_final = (li == n - 1) and not return_intermediate
        x = decoder_layer(x, memory, src_mask_i8, tgt_mask_i8, layer_p, num_heads,
                          causal_tgt, attn_tile,
                          final_ln=final_ln if fuse_final else None)
        z.append(x)
    if return_intermediate:
        return pallas_layernorm(x, params["norm_a"], params["norm_b"]), z
    return x    # final decoder LayerNorm already fused into the last FFN call


# ---------------------------- deterministic init ---------------------------

def _dense(key, din, dout):
    w = (0.02 * jax.random.normal(key, (din, dout), jnp.float32)).astype(jnp.bfloat16)
    b = jnp.zeros((1, dout), jnp.float32)
    return w, b


def init_decoder_params(key, n_layers, d_model, d_ff):
    keys = jax.random.split(key, n_layers)
    ones = jnp.ones((1, d_model), jnp.float32)
    zeros = jnp.zeros((1, d_model), jnp.float32)
    layers = []
    for i in range(n_layers):
        ks = jax.random.split(keys[i], 10)
        wq, bq = _dense(ks[0], d_model, d_model)
        wk, bk = _dense(ks[1], d_model, d_model)
        wv, bv = _dense(ks[2], d_model, d_model)
        wo, bo = _dense(ks[3], d_model, d_model)
        self_attn = {
            "wqkv": jnp.concatenate([wq, wk, wv], axis=1),   # single wide MXU pass
            "bqkv": jnp.concatenate([bq, bk, bv], axis=1),
            "wo": wo, "bo": bo,
        }
        wq2, bq2 = _dense(ks[4], d_model, d_model)
        wk2, bk2 = _dense(ks[5], d_model, d_model)
        wv2, bv2 = _dense(ks[6], d_model, d_model)
        wo2, bo2 = _dense(ks[7], d_model, d_model)
        src_attn = {
            "wq": wq2, "bq": bq2,
            "wkv": jnp.concatenate([wk2, wv2], axis=1),
            "bkv": jnp.concatenate([bk2, bv2], axis=1),
            "wo": wo2, "bo": bo2,
        }
        w1, b1 = _dense(ks[8], d_model, d_ff)
        w2, b2 = _dense(ks[9], d_ff, d_model)
        layers.append({
            "self_attn": self_attn,
            "src_attn": src_attn,
            "ff": {"w1": w1, "b1": b1, "w2": w2, "b2": b2},
            "ln0_a": ones, "ln0_b": zeros,
            "ln1_a": ones, "ln1_b": zeros,
            "ln2_a": ones, "ln2_b": zeros,
        })
    return {
        "layers": layers,
        "norm_a": jnp.ones((1, d_model), jnp.float32),
        "norm_b": jnp.zeros((1, d_model), jnp.float32),
    }


# ---------------------------------- main -----------------------------------

if __name__ == "__main__":
    def run(B, T, S, D, H, DFF, NL, attn_tile):
        key = jax.random.PRNGKey(0)
        kx, km, kp = jax.random.split(key, 3)
        x = jax.random.normal(kx, (B, T, D), jnp.float32)
        memory = jax.random.normal(km, (B, S, D), jnp.float32)
        # src_mask: (B, 1, S) padding mask; tgt_mask: (1, T, T) subsequent mask.
        src_mask = jnp.ones((B, 1, S), jnp.float32).at[1, :, S - 2:].set(0.0)
        tgt_mask = jnp.tril(jnp.ones((T, T), jnp.float32))[None, :, :]
        params = init_decoder_params(kp, NL, D, DFF)
        out = decoder_forward(x, memory, src_mask, tgt_mask, params,
                              num_heads=H, attn_tile=attn_tile)
        out = jax.block_until_ready(out)
        assert out.shape == (B, T, D)
        assert bool(jnp.all(jnp.isfinite(out.astype(jnp.float32))))

    # 1) tiny config (single q/k tile path)
    run(B=2, T=8, S=8, D=32, H=4, DFF=64, NL=2, attn_tile=256)
    # 2) config that exercises flash q/k tiling + causal K-tile skipping
    run(B=2, T=256, S=256, D=128, H=4, DFF=256, NL=1, attn_tile=128)
    print("KERNEL_OK")
</pallas_src>

<mosaic_0001>
module attributes {stable_mosaic.version = 11 : i64} {
  func.func @_probe(%arg0: i32, %arg1: memref<8x128xf32, #tpu.memory_space<vmem>>, %arg2: memref<8x128xf32, #tpu.memory_space<vmem>>) attributes {dimension_semantics = [#tpu.dimension_semantics<arbitrary>], iteration_bounds = array<i64: 1>, scalar_prefetch = 0 : i64, scratch_operands = 0 : i64, tpu.core_type = #tpu.core_type<tc>, window_params = [{pipeline_mode = #tpu.pipeline_mode<synchronous>, transform_indices = @transform_0, window_bounds = array<i64: 8, 128>}, {pipeline_mode = #tpu.pipeline_mode<synchronous>, transform_indices = @transform_1, window_bounds = array<i64: 8, 128>}]} {
    %c0 = arith.constant 0 : index
    %c0_0 = arith.constant 0 : index
    %0 = vector.load %arg1[%c0, %c0_0] : memref<8x128xf32, #tpu.memory_space<vmem>>, vector<8x128xf32>
    %cst = arith.constant 1.000000e+00 : f32
    %1 = vector.broadcast %cst : f32 to vector<8x128xf32>
    %2 = arith.addf %0, %1 : vector<8x128xf32>
    %c0_1 = arith.constant 0 : index
    %c0_2 = arith.constant 0 : index
    %3 = vector.load %arg2[%c0_1, %c0_2] : memref<8x128xf32, #tpu.memory_space<vmem>>, vector<8x128xf32>
    tpu.vector_store %arg2[%c0_1, %c0_2], %2 {strides = array<i32>} : memref<8x128xf32, #tpu.memory_space<vmem>>, vector<8x128xf32>,
    return
  }
  func.func @transform_0(%arg0: i32) -> (i32, i32) {
    %c0_i32 = arith.constant 0 : i32
    %c0_i32_0 = arith.constant 0 : i32
    %c0_i32_1 = arith.constant 0 : i32
    return %c0_i32, %c0_i32_0 : i32, i32
  }
  func.func @transform_1(%arg0: i32) -> (i32, i32) {
    %c0_i32 = arith.constant 0 : i32
    %c0_i32_0 = arith.constant 0 : i32
    %c0_i32_1 = arith.constant 0 : i32
    return %c0_i32, %c0_i32_0 : i32, i32
  }
}

module attributes {stable_mosaic.version = 11 : i64} {
  func.func @_ln_qkv_proj_kernel(%arg0: i32, %arg1: memref<16x32xbf16, #tpu.memory_space<vmem>>, %arg2: memref<1x32xf32, #tpu.memory_space<vmem>>, %arg3: memref<1x32xf32, #tpu.memory_space<vmem>>, %arg4: memref<32x96xbf16, #tpu.memory_space<vmem>>, %arg5: memref<1x96xf32, #tpu.memory_space<vmem>>, %arg6: memref<16x32xbf16, #tpu.memory_space<vmem>>, %arg7: memref<16x32xbf16, #tpu.memory_space<vmem>>, %arg8: memref<16x32xbf16, #tpu.memory_space<vmem>>) attributes {dimension_semantics = [#tpu.dimension_semantics<parallel>], iteration_bounds = array<i64: 1>, scalar_prefetch = 0 : i64, scratch_operands = 0 : i64, tpu.core_type = #tpu.core_type<tc>, window_params = [{transform_indices = @transform_0, window_bounds = array<i64: 16, 32>}, {pipeline_mode = #tpu.pipeline_mode<synchronous>, transform_indices = @transform_1, window_bounds = array<i64: 1, 32>}, {pipeline_mode = #tpu.pipeline_mode<synchronous>, transform_indices = @transform_2, window_bounds = array<i64: 1, 32>}, {pipeline_mode = #tpu.pipeline_mode<synchronous>, transform_indices = @transform_3, window_bounds = array<i64: 32, 96>}, {pipeline_mode = #tpu.pipeline_mode<synchronous>, transform_indices = @transform_4, window_bounds = array<i64: 1, 96>}, {transform_indices = @transform_5, window_bounds = array<i64: 16, 32>}, {transform_indices = @transform_6, window_bounds = array<i64: 16, 32>}, {transform_indices = @transform_7, window_bounds = array<i64: 16, 32>}]} {
    %c0 = arith.constant 0 : index
    %c0_0 = arith.constant 0 : index
    %0 = vector.load %arg1[%c0, %c0_0] : memref<16x32xbf16, #tpu.memory_space<vmem>>, vector<16x32xbf16>
    %1 = arith.extf %0 : vector<16x32xbf16> to vector<16x32xf32>
    %c0_1 = arith.constant 0 : index
    %c0_2 = arith.constant 0 : index
    %2 = vector.load %arg2[%c0_1, %c0_2] : memref<1x32xf32, #tpu.memory_space<vmem>>, vector<1x32xf32>
    %c0_3 = arith.constant 0 : index
    %c0_4 = arith.constant 0 : index
    %3 = vector.load %arg3[%c0_3, %c0_4] : memref<1x32xf32, #tpu.memory_space<vmem>>, vector<1x32xf32>
    %cst = arith.constant dense<0.000000e+00> : vector<16xf32>
    %4 = vector.multi_reduction <add>, %1, %cst [1] : vector<16x32xf32> to vector<16xf32>
    %5 = vector.shape_cast %4 : vector<16xf32> to vector<16x1xf32>
    %cst_5 = arith.constant 3.200000e+01 : f32
    %6 = vector.broadcast %cst_5 : f32 to vector<16x1xf32>
    %7 = arith.divf %5, %6 : vector<16x1xf32>
    %8 = vector.broadcast %7 : vector<16x1xf32> to vector<16x32xf32>
    %9 = arith.subf %1, %8 : vector<16x32xf32>
    %10 = arith.mulf %9, %9 : vector<16x32xf32>
    %cst_6 = arith.constant dense<0.000000e+00> : vector<16xf32>
    %11 = vector.multi_reduction <add>, %10, %cst_6 [1] : vector<16x32xf32> to vector<16xf32>
    %12 = vector.shape_cast %11 : vector<16xf32> to vector<16x1xf32>
    %cst_7 = arith.constant 3.100000e+01 : f32
    %13 = vector.broadcast %cst_7 : f32 to vector<16x1xf32>
    %14 = arith.divf %12, %13 : vector<16x1xf32>
    %15 = math.sqrt %14 : vector<16x1xf32>
    %16 = vector.broadcast %2 : vector<1x32xf32> to vector<16x32xf32>
    %17 = arith.mulf %16, %9 : vector<16x32xf32>
    %cst_8 = arith.constant 9.99999997E-7 : f32
    %18 = vector.broadcast %cst_8 : f32 to vector<16x1xf32>
    %19 = arith.addf %15, %18 : vector<16x1xf32>
    %20 = vector.broadcast %19 : vector<16x1xf32> to vector<16x32xf32>
    %21 = arith.divf %17, %20 : vector<16x32xf32>
    %22 = vector.broadcast %3 : vector<1x32xf32> to vector<16x32xf32>
    %23 = arith.addf %21, %22 : vector<16x32xf32>
    %24 = arith.truncf %23 : vector<16x32xf32> to vector<16x32xbf16>
    %c0_9 = arith.constant 0 : index
    %c0_10 = arith.constant 0 : index
    %25 = vector.load %arg4[%c0_9, %c0_10] : memref<32x96xbf16, #tpu.memory_space<vmem>>, vector<32x96xbf16>
    %cst_11 = arith.constant dense<0.000000e+00> : vector<16x96xf32>
    %26 = tpu.matmul %24, %25, %cst_11 {dimension_numbers = #tpu.dot_dimension_numbers<[1], [0], [0], [1], [0, 0, 1, 1], [], []>} : vector<16x32xbf16>, vector<32x96xbf16>, vector<16x96xf32> -> vector<16x96xf32>
    %c0_12 = arith.constant 0 : index
    %c0_13 = arith.constant 0 : index
    %27 = vector.load %arg5[%c0_12, %c0_13] : memref<1x96xf32, #tpu.memory_space<vmem>>, vector<1x96xf32>
    %28 = vector.broadcast %27 : vector<1x96xf32> to vector<16x96xf32>
    %29 = arith.addf %26, %28 : vector<16x96xf32>
    %30 = vector.extract_strided_slice %29 {offsets = [0, 0], sizes = [16, 32], strides = [1, 1]} : vector<16x96xf32> to vector<16x32xf32>
    %31 = arith.truncf %30 : vector<16x32xf32> to vector<16x32xbf16>
    %c0_14 = arith.constant 0 : index
    %c0_15 = arith.constant 0 : index
    %32 = vector.load %arg6[%c0_14, %c0_15] : memref<16x32xbf16, #tpu.memory_space<vmem>>, vector<16x32xbf16>
    tpu.vector_store %arg6[%c0_14, %c0_15], %31 {strides = array<i32>} : memref<16x32xbf16, #tpu.memory_space<vmem>>, vector<16x32xbf16>,
    %33 = vector.extract_strided_slice %29 {offsets = [0, 32], sizes = [16, 32], strides = [1, 1]} : vector<16x96xf32> to vector<16x32xf32>
    %34 = arith.truncf %33 : vector<16x32xf32> to vector<16x32xbf16>
    %c0_16 = arith.constant 0 : index
    %c0_17 = arith.constant 0 : index
    %35 = vector.load %arg7[%c0_16, %c0_17] : memref<16x32xbf16, #tpu.memory_space<vmem>>, vector<16x32xbf16>
    tpu.vector_store %arg7[%c0_16, %c0_17], %34 {strides = array<i32>} : memref<16x32xbf16, #tpu.memory_space<vmem>>, vector<16x32xbf16>,
    %36 = vector.extract_strided_slice %29 {offsets = [0, 64], sizes = [16, 32], strides = [1, 1]} : vector<16x96xf32> to vector<16x32xf32>
    %37 = arith.truncf %36 : vector<16x32xf32> to vector<16x32xbf16>
    %c0_18 = arith.constant 0 : index
    %c0_19 = arith.constant 0 : index
    %38 = vector.load %arg8[%c0_18, %c0_19] : memref<16x32xbf16, #tpu.memory_space<vmem>>, vector<16x32xbf16>
    tpu.vector_store %arg8[%c0_18, %c0_19], %37 {strides = array<i32>} : memref<16x32xbf16, #tpu.memory_space<vmem>>, vector<16x32xbf16>,
    return
  }
  func.func @transform_0(%arg0: i32) -> (i32, i32) {
    %c0_i32 = arith.constant 0 : i32
    %c0_i32_0 = arith.constant 0 : i32
    return %arg0, %c0_i32 : i32, i32
  }
  func.func @transform_1(%arg0: i32) -> (i32, i32) {
    %c0_i32 = arith.constant 0 : i32
    %c0_i32_0 = arith.constant 0 : i32
    %c0_i32_1 = arith.constant 0 : i32
    return %c0_i32, %c0_i32_0 : i32, i32
  }
  func.func @transform_2(%arg0: i32) -> (i32, i32) {
    %c0_i32 = arith.constant 0 : i32
    %c0_i32_0 = arith.constant 0 : i32
    %c0_i32_1 = arith.constant 0 : i32
    return %c0_i32, %c0_i32_0 : i32, i32
  }
  func.func @transform_3(%arg0: i32) -> (i32, i32) {
    %c0_i32 = arith.constant 0 : i32
    %c0_i32_0 = arith.constant 0 : i32
    %c0_i32_1 = arith.constant 0 : i32
    return %c0_i32, %c0_i32_0 : i32, i32
  }
  func.func @transform_4(%arg0: i32) -> (i32, i32) {
    %c0_i32 = arith.constant 0 : i32
    %c0_i32_0 = arith.constant 0 : i32
    %c0_i32_1 = arith.constant 0 : i32
    return %c0_i32, %c0_i32_0 : i32, i32
  }
  func.func @transform_5(%arg0: i32) -> (i32, i32) {
    %c0_i32 = arith.constant 0 : i32
    %c0_i32_0 = arith.constant 0 : i32
    return %arg0, %c0_i32 : i32, i32
  }
  func.func @transform_6(%arg0: i32) -> (i32, i32) {
    %c0_i32 = arith.constant 0 : i32
    %c0_i32_0 = arith.constant 0 : i32
    return %arg0, %c0_i32 : i32, i32
  }
  func.func @transform_7(%arg0: i32) -> (i32, i32) {
    %c0_i32 = arith.constant 0 : i32
    %c0_i32_0 = arith.constant 0 : i32
    return %arg0, %c0_i32 : i32, i32
  }
}

</mosaic_0001>

<bundles_post_ra>
// kernel: tpu_custom_call.1
= control target key start
LH: loop header
LB: loop body
LE: loop exit
PB: predicated region body
PF: predicated region fallthrough
CT: control target
= control target key end

     0   :  { %6 = vsyncpa [#allocation3], 0  ;;  %s125_s0 = inlined_call_operand.hbm [shape: f32[8,128], index: 0, kind: input, shape index: {}]   ;;  %s126_s1 = inlined_call_operand.hbm [shape: f32[8,128], index: 1, kind: output, shape index: {}]  }
   0x1   :  { %7 = vsyncpa [#allocation4], 0  ;;  %s89_s6 = smov [#allocation2]   ;;  %s41_s10 = scalar_lea.hbm %s125_s0, 128 }
   0x2   :  { %s14_s7 = sshll.u32 %s89_s6, 4  ;;  %p42_p0 = scmp.ne.s32.totalorder %s125_s0, %s41_s10  ;;  %s15_s7 = int_to_ptr.vmem [resolvable:$true] %s14_s7 }
   0x3   :  { %p45_p1 = scmp.lt.u32.totalorder %s41_s10, %s125_s0 }
   0x5   :  { %p47_p2 = pnand %p45_p1, %p42_p0 }
   0x7   :  { %50 = shalt.err (!%p47_p2)
}
   0x8   :  { %s51_s15 = scalar_lea.vmem %s15_s7, 128  ;;  %p56_p4 = scmp.lt.s32.totalorder %s15_s7, %s15_s7 }
   0x9   :  { %p52_p3 = scmp.ne.s32.totalorder %s15_s7, %s51_s15  ;;  %p57_p5 = scmp.lt.s32.totalorder %s51_s15, %s51_s15 }
   0xb   :  { %p58_p6 = por %p57_p5, %p56_p4 }
   0xd   :  { %p59_p7 = pnand %p58_p6, %p52_p3 }
   0xf   :  { %62 = shalt.err (!%p59_p7)
}
  0x10   :  { %17 = dma.hbm_to_vmem [thread:$0]  %s125_s0, 128, %s15_s7, [#allocation3]  }
  0x11   :  { %85 = dma.done.wait [#allocation3], 128  }
  0x12   :  { %86 = vsyncadd [#allocation3], 4294967168  ;;  %s90_s18 = smov [#allocation5]   ;;  %v21_v0 = vld [vmem:[#allocation2] sm:$0xff] }
  0x13   :  { %s30_s19 = sshll.u32 %s90_s18, 4  ;;  %v22_v1 = vadd.f32 1.0, %v21_v0  ;;  %s31_s19 = int_to_ptr.vmem [resolvable:$true] %s30_s19 }
  0x14   :  { %s63_s20 = scalar_lea.vmem %s31_s19, 128  ;;  %p68_p9 = scmp.lt.s32.totalorder %s31_s19, %s31_s19 }
  0x15   :  { %23 = vst [vmem:[#allocation5] sm:$0xff] %v22_v1  ;;  %p64_p8 = scmp.ne.s32.totalorder %s31_s19, %s63_s20  ;;  %p69_p10 = scmp.lt.s32.totalorder %s63_s20, %s63_s20 }
  0x17   :  { %p70_p11 = por %p69_p10, %p68_p9 }
  0x19   :  { %p71_p12 = pnand %p70_p11, %p64_p8 }
  0x1b   :  { %74 = shalt.err (!%p71_p12)
}
  0x1c   :  { %s75_s23 = scalar_lea.hbm %s126_s1, 128 }
  0x1d   :  { %p76_p13 = scmp.ne.s32.totalorder %s126_s1, %s75_s23  ;;  %p79_p0 = scmp.lt.u32.totalorder %s75_s23, %s126_s1 }
  0x1f   :  { %p81_p1 = pnand %p79_p0, %p76_p13 }
  0x21   :  { %84 = shalt.err (!%p81_p1)
}
  0x22   :  { %33 = dma.vmem_to_hbm [thread:$0]  %s31_s19, 128, %s126_s1, [#allocation4]  }
  0x23   :  { %87 = dma.done.wait [#allocation4], 128  }
  0x24   :  { %88 = vsyncadd [#allocation4], 4294967168 }
  0x25   :  { %37 = vsyncpa [#allocation3], 1 }
  0x26   :  { %38 = vsyncpa [#allocation4], 1 }

// kernel: tpu_custom_call.1
= control target key start
LH: loop header
LB: loop body
LE: loop exit
PB: predicated region body
PF: predicated region fallthrough
CT: control target
= control target key end

     0   :  { %13 = vsyncpa [#allocation3], 0  ;;  %s573_s0 = inlined_call_operand.hbm [shape: bf16[16,32], index: 0, kind: input, shape index: {}]   ;;  %s574_s1 = inlined_call_operand.vmem [shape: f32[1,32], index: 1, kind: input, shape index: {}]   ;;  %s575_s2 = inlined_call_operand.vmem [shape: f32[1,32], index: 2, kind: input, shape index: {}]   ;;  %s576_s3 = inlined_call_operand.hbm [shape: bf16[32,96], index: 3, kind: input, shape index: {}]   ;;  %s577_s4 = inlined_call_operand.vmem [shape: f32[1,96], index: 4, kind: input, shape index: {}]   ;;  %s578_s5 = inlined_call_operand.hbm [shape: bf16[16,32], index: 5, kind: output, shape index: {0}]   ;;  %s579_s6 = inlined_call_operand.hbm [shape: bf16[16,32], index: 6, kind: output, shape index: {1}]   ;;  %s580_s7 = inlined_call_operand.hbm [shape: bf16[16,32], index: 7, kind: output, shape index: {2}]  }
   0x1   :  { %14 = vsyncpa [#allocation6], 0 }
   0x2   :  { %15 = vsyncpa [#allocation4], 0 }
   0x3   :  { %16 = vsyncpa [#allocation9], 0  ;;  %s426_s24 = smov [#allocation2]   ;;  %s308_s28 = scalar_lea.hbm %s573_s0, 128 }
   0x4   :  { %s22_s25 = sshll.u32 %s426_s24, 4  ;;  %p309_p0 = scmp.ne.s32.totalorder %s573_s0, %s308_s28  ;;  %s23_s25 = int_to_ptr.vmem [resolvable:$true] %s22_s25 }
   0x5   :  { %p312_p1 = scmp.lt.u32.totalorder %s308_s28, %s573_s0 }
   0x7   :  { %p314_p2 = pnand %p312_p1, %p309_p0 }
   0x9   :  { %317 = shalt.err (!%p314_p2)
}
   0xa   :  { %s318_s10 = scalar_lea.vmem %s23_s25, 128  ;;  %p323_p4 = scmp.lt.s32.totalorder %s23_s25, %s23_s25 }
   0xb   :  { %p319_p3 = scmp.ne.s32.totalorder %s23_s25, %s318_s10  ;;  %p324_p5 = scmp.lt.s32.totalorder %s318_s10, %s318_s10 }
   0xd   :  { %p325_p6 = por %p324_p5, %p323_p4 }
   0xf   :  { %p326_p7 = pnand %p325_p6, %p319_p3 }
  0x11   :  { %329 = shalt.err (!%p326_p7)
}
  0x12   :  { %s427_s11 = smov 64   ;;  %s428_s12 = smov 4  }
  0x13   :  { %28 = dma.hbm_to_vmem [thread:$0]  %s573_s0, 128, %s23_s25, [#allocation3], %s427_s11, %s427_s11, %s428_s12  }
  0x14   :  { %s429_s15 = smov [#allocation5]   ;;  %s330_s19 = scalar_lea.hbm %s576_s3, 256 }
  0x15   :  { %s38_s16 = sshll.u32 %s429_s15, 4  ;;  %p331_p8 = scmp.ne.s32.totalorder %s576_s3, %s330_s19  ;;  %s39_s16 = int_to_ptr.vmem [resolvable:$true] %s38_s16 }
  0x16   :  { %p334_p9 = scmp.lt.u32.totalorder %s330_s19, %s576_s3 }
  0x18   :  { %p336_p10 = pnand %p334_p9, %p331_p8 }
  0x1a   :  { %339 = shalt.err (!%p336_p10)
}
  0x1b   :  { %s340_s24 = scalar_lea.vmem %s39_s16, 256  ;;  %p345_p12 = scmp.lt.s32.totalorder %s39_s16, %s39_s16 }
  0x1c   :  { %p341_p11 = scmp.ne.s32.totalorder %s39_s16, %s340_s24  ;;  %p346_p13 = scmp.lt.s32.totalorder %s340_s24, %s340_s24 }
  0x1e   :  { %p347_p0 = por %p346_p13, %p345_p12 }
  0x20   :  { %p348_p1 = pnand %p347_p0, %p341_p11 }
  0x22   :  { %351 = shalt.err (!%p348_p1)
}
  0x23   :  { %44 = dma.hbm_to_vmem [thread:$0]  %s576_s3, 256, %s39_s16, [#allocation6], %s427_s11, %s427_s11, %s428_s12  }
  0x24   :  { %418 = dma.done.wait [#allocation3], 128  }
  0x25   :  { %419 = vsyncadd [#allocation3], 4294967168 }
  0x26   :  { %420 = dma.done.wait [#allocation6], 256  }
  0x27   :  { %421 = vsyncadd [#allocation6], 4294967040  ;;  %v274_v0 = vld [vmem:[#allocation2] sm:$0xff]   ;;  %vm60_vm0 = vcmask 261120   ;;  %v298_v15 = vld [vmem:[#allocation5] sm:$0xff]   ;;  %v430_v16 = vmov 0.0  }
  0x28   :  { %v275_v1 = vunpack.c.l.bf16 %v274_v0  ;;  %v276_v2 = vunpack.c.h.bf16 %v274_v0  ;;  %280 = vmatprep.subr.bf16.mxu0 %v430_v16  ;;  %vm431_vm1 = vmmov 0   ;;  %v299_v17 = vld [vmem:[#allocation5 + $0x8] sm:$0xff]   ;;  %v263_v34 = vld [vmem:[%s574_s1] ss:$0 sm:$0xff]  ;;  %vm195_vm6 = vcmask 257024   ;;  %s432_s1 = smov [#allocation7]  }
  0x29   :  { %284 = vmatprep.mubr.msk.bf16.mxu0 %vm431_vm1, %v430_v16  ;;  %281 = vmatpush3.bf16.msra.mxu0 %v298_v15  ;;  %v264_v40 = vld [vmem:[%s575_s2] ss:$0 sm:$0xff]  ;;  %s219_s8 = sshll.u32 %s432_s1, 4  ;;  %s433_s2 = smov 96   ;;  %s220_s8 = int_to_ptr.vmem [resolvable:$true] %s219_s8 }
  0x2a   :  { %v61_v3 = vsel %vm60_vm0, %v275_v1, 0.0  ;;  %v64_v4 = vsel %vm60_vm0, %v276_v2, 0.0  ;;  %282 = vmatprep.subr.bf16.mxu0 %v430_v16  ;;  %v265_v45 = vld [vmem:[%s577_s4] ss:$0 sm:$0xff]  ;;  %s352_s4 = scalar_lea.vmem %s220_s8, 128  ;;  %p357_p3 = scmp.lt.s32.totalorder %s220_s8, %s220_s8 }
  0x2b   :  { %62 = vadd.xlane.f32.xlu0 %v61_v3  ;;  %p353_p2 = scmp.ne.s32.totalorder %s220_s8, %s352_s4  ;;  %p358_p4 = scmp.lt.s32.totalorder %s352_s4, %s352_s4 }
  0x2d   :  { %283 = vmatpush3.bf16.msra.mxu0 %v299_v17  ;;  %p359_p5 = por %p358_p4, %p357_p3 }
  0x2f   :  { %65 = vadd.xlane.f32.xlu0 %v64_v4  ;;  %p360_p6 = pnand %p359_p5, %p353_p2 }
  0xb8   :  { %v63_v5 = vpop.xlane.xlu0 %62 }
  0xb9   :  { %v68_v6 = vmul.f32 0.03125, %v63_v5 }
  0xbb   :  { %v70_v7 = vsub.f32 %v275_v1, %v68_v6 }
  0xbc   :  { %v66_v8 = vpop.xlane.xlu0 %65 }
  0xbd   :  { %v69_v9 = vmul.f32 0.03125, %v66_v8  ;;  %v72_v10 = vmul.f32 %v70_v7, %v70_v7  ;;  %v103_v36 = vmul.f32 %v263_v34, %v70_v7 }
  0xbf   :  { %v71_v11 = vsub.f32 %v276_v2, %v69_v9  ;;  %v74_v12 = vsel %vm60_vm0, %v72_v10, 0.0 }
  0xc0   :  { %75 = vadd.xlane.f32.xlu1 %v74_v12 }
  0xc1   :  { %v73_v13 = vmul.f32 %v71_v11, %v71_v11  ;;  %v104_v37 = vmul.f32 %v263_v34, %v71_v11 }
  0xc3   :  { %v77_v14 = vsel %vm60_vm0, %v73_v13, 0.0 }
  0xc4   :  { %78 = vadd.xlane.f32.xlu1 %v77_v14 }
 0x14d   :  { %v76_v18 = vpop.xlane.xlu1 %75 }
 0x14e   :  { %v81_v19 = vmul.f32 0.032258064, %v76_v18 }
 0x150   :  { %300 = vrsqrt.f32 %v81_v19  ;;  %vm85_vm2 = vcmp.eq.f32.partialorder %v81_v19, inf  ;;  %v88_v24 = vand.u32 2147483648, %v81_v19  ;;  %vm87_vm3 = vcmp.eq.f32.partialorder %v81_v19, 0.0 }
 0x151   :  { %v79_v20 = vpop.xlane.xlu1 %78 }
 0x152   :  { %v82_v21 = vmul.f32 0.032258064, %v79_v20 }
 0x154   :  { %302 = vrsqrt.f32 %v82_v21  ;;  %vm92_vm4 = vcmp.eq.f32.partialorder %v82_v21, inf  ;;  %v95_v30 = vand.u32 2147483648, %v82_v21  ;;  %vm94_vm5 = vcmp.eq.f32.partialorder %v82_v21, 0.0 }
 0x15a   :  { %v301_v22 = vpop.eup %300 }
 0x15b   :  { %v84_v23 = vmul.f32 %v301_v22, %v81_v19 }
 0x15d   :  { %v86_v25 = vsel %vm85_vm2, %v81_v19, %v84_v23 }
 0x15e   :  { %v303_v26 = vpop.eup %302  ;;  %v89_v27 = vsel %vm87_vm3, %v88_v24, %v86_v25 }
 0x15f   :  { %v105_v28 = vadd.f32 1e-06, %v89_v27  ;;  %v91_v29 = vmul.f32 %v303_v26, %v82_v21 }
 0x161   :  { %304 = vrcp.f32 %v105_v28  ;;  %v93_v31 = vsel %vm92_vm4, %v82_v21, %v91_v29 }
 0x162   :  { %v96_v32 = vsel %vm94_vm5, %v95_v30, %v93_v31 }
 0x163   :  { %v106_v33 = vadd.f32 1e-06, %v96_v32 }
 0x165   :  { %306 = vrcp.f32 %v106_v33 }
 0x16b   :  { %v305_v35 = vpop.eup %304 }
 0x16c   :  { %v108_v38 = vmul.f32 %v305_v35, %v103_v36 }
 0x16e   :  { %v117_v42 = vadd.f32 %v264_v40, %v108_v38 }
 0x16f   :  { %v307_v39 = vpop.eup %306 }
 0x170   :  { %v110_v41 = vmul.f32 %v307_v39, %v104_v37 }
 0x172   :  { %v118_v43 = vadd.f32 %v264_v40, %v110_v41 }
 0x174   :  { %v119_v44 = vpack.c.bf16 %v118_v43, %v117_v42 }
 0x176   :  { %285 = vmatmul.mubr.msk.bf16.vlgmr.msra.gmra.mrb[0].mxu0 %vm60_vm0, %v119_v44 }
 0x249   :  { %v180_v46 = vpop.f32.mrb[0].mxu0 }
 0x24a   :  { %v181_v47 = vadd.f32 %v265_v45, %v180_v46  ;;  %v286_v48 = vpop.f32.mrb[1].mxu0 }
 0x24b   :  { %v183_v49 = vpop.f32.mrb[2].mxu0 }
 0x24c   :  { %v271_v50 = vpack.c.bf16 %v181_v47, %v181_v47  ;;  %v184_v51 = vadd.f32 %v265_v45, %v183_v49  ;;  %v287_v52 = vpop.f32.mrb[3].mxu0 }
 0x24e   :  { %v272_v53 = vpack.c.bf16 %v184_v51, %v184_v51  ;;  %206 = vrot.lane.b32.xlu1 %v271_v50, %s427_s11  ;;  %198 = vrot.lane.b32.xlu0 %v271_v50, %s433_s2  ;;  %196 = vst.msk [vmem:[#allocation7] sm:$0xf] %vm195_vm6, %v271_v50 }
 0x250   :  { %197 = vst.msk [vmem:[#allocation7 + $0x4] sm:$0xf] %vm195_vm6, %v272_v53 }
 0x251   :  { %363 = shalt.err (!%p360_p6)
}
 0x252   :  { %s364_s13 = scalar_lea.hbm %s578_s5, 128 }
 0x253   :  { %p365_p7 = scmp.ne.s32.totalorder %s578_s5, %s364_s13  ;;  %p368_p8 = scmp.lt.u32.totalorder %s364_s13, %s578_s5 }
 0x255   :  { %p370_p9 = pnand %p368_p8, %p365_p7 }
 0x257   :  { %373 = shalt.err (!%p370_p9)
}
 0x258   :  { %225 = dma.vmem_to_hbm [thread:$0]  %s220_s8, 128, %s578_s5, [#allocation4], %s427_s11, %s427_s11, %s428_s12  }
 0x259   :  { %200 = vrot.lane.b32.xlu1 %v272_v53, %s433_s2  ;;  %s434_s20 = smov [#allocation8]   ;;  %s435_s22 = smov [#allocation10]  }
 0x25a   :  { %s231_s21 = sshll.u32 %s434_s20, 4  ;;  %s243_s23 = sshll.u32 %s435_s22, 4  ;;  %s232_s21 = int_to_ptr.vmem [resolvable:$true] %s231_s21  ;;  %s244_s23 = int_to_ptr.vmem [resolvable:$true] %s243_s23 }
 0x25b   :  { %s374_s24 = scalar_lea.vmem %s232_s21, 128  ;;  %p379_p11 = scmp.lt.s32.totalorder %s232_s21, %s232_s21 }
 0x25c   :  { %p375_p10 = scmp.ne.s32.totalorder %s232_s21, %s374_s24  ;;  %p380_p12 = scmp.lt.s32.totalorder %s374_s24, %s374_s24 }
 0x25d   :  { %208 = vrot.lane.b32.xlu1 %v272_v53, %s427_s11 }
 0x25e   :  { %p381_p13 = por %p380_p12, %p379_p11 }
 0x260   :  { %p382_p0 = pnand %p381_p13, %p375_p10 }
 0x2c0   :  { %v207_v54 = vpop.permute.xlu1 %206  ;;  %v199_v55 = vpop.permute.xlu0 %198 }
 0x2c1   :  { %212 = vst.msk [vmem:[#allocation10] sm:$0xf] %vm195_vm6, %v207_v54  ;;  %204 = vst.msk [vmem:[#allocation8] sm:$0xf] %vm195_vm6, %v199_v55 }
 0x2cb   :  { %v201_v56 = vpop.permute.xlu1 %200 }
 0x2cc   :  { %205 = vst.msk [vmem:[#allocation8 + $0x4] sm:$0xf] %vm195_vm6, %v201_v56 }
 0x2cd   :  { %385 = shalt.err (!%p382_p0)
}
 0x2ce   :  { %s386_s25 = scalar_lea.hbm %s579_s6, 128 }
 0x2cf   :  { %p387_p1 = scmp.ne.s32.totalorder %s579_s6, %s386_s25  ;;  %p390_p2 = scmp.lt.u32.totalorder %s386_s25, %s579_s6 }
 0x2d1   :  { %p392_p3 = pnand %p390_p2, %p387_p1 }
 0x2d3   :  { %395 = shalt.err (!%p392_p3)
}
 0x2d4   :  { %237 = dma.vmem_to_hbm [thread:$0]  %s232_s21, 128, %s579_s6, [#allocation9], %s427_s11, %s427_s11, %s428_s12   ;;  %v209_v57 = vpop.permute.xlu1 %208 }
 0x2d5   :  { %213 = vst.msk [vmem:[#allocation10 + $0x4] sm:$0xf] %vm195_vm6, %v209_v57  ;;  %s396_s1 = scalar_lea.vmem %s244_s23, 128  ;;  %p401_p5 = scmp.lt.s32.totalorder %s244_s23, %s244_s23 }
 0x2d6   :  { %p397_p4 = scmp.ne.s32.totalorder %s244_s23, %s396_s1  ;;  %p402_p6 = scmp.lt.s32.totalorder %s396_s1, %s396_s1 }
 0x2d8   :  { %p403_p7 = por %p402_p6, %p401_p5 }
 0x2da   :  { %p404_p8 = pnand %p403_p7, %p397_p4 }
 0x2dc   :  { %407 = shalt.err (!%p404_p8)
}
 0x2dd   :  { %s408_s4 = scalar_lea.hbm %s580_s7, 128 }
 0x2de   :  { %p409_p9 = scmp.ne.s32.totalorder %s580_s7, %s408_s4  ;;  %p412_p10 = scmp.lt.u32.totalorder %s408_s4, %s580_s7 }
 0x2e0   :  { %p414_p11 = pnand %p412_p10, %p409_p9 }
 0x2e2   :  { %417 = shalt.err (!%p414_p11)
}
 0x2e3   :  { %249 = dma.vmem_to_hbm [thread:$0]  %s244_s23, 128, %s580_s7, [#allocation9], %s427_s11, %s427_s11, %s428_s12  }
 0x2e4   :  { %422 = dma.done.wait [#allocation4], 128  }
 0x2e5   :  { %423 = vsyncadd [#allocation4], 4294967168 }
 0x2e6   :  { %424 = dma.done.wait [#allocation9], 256  }
 0x2e7   :  { %425 = vsyncadd [#allocation9], 4294967040 }
 0x2e8   :  { %259 = vsyncpa [#allocation3], 1 }
 0x2e9   :  { %260 = vsyncpa [#allocation6], 1 }
 0x2ea   :  { %261 = vsyncpa [#allocation4], 1 }
 0x2eb   :  { %262 = vsyncpa [#allocation9], 1 }

</bundles_post_ra>
